<compile_context>
chip_gen: v7x
topology: tpu7x:2x2x1
jax: 0.10.0
libtpu: 0.0.40
codegen_flags: <defaults>
</compile_context>

<pallas_src>
import math

import jax
import jax.numpy as jnp
from jax.experimental import pallas as pl
from jax.experimental.pallas import tpu as pltpu

# ---- hyperparameters (small, consistent with TransformerNet.__init__) ----
EMBED = 32         # embedding_dim
HIDDEN = 64        # hidden_dim (FFN width)
OUT_DIM = 4        # output_dim
N_HEADS = 4
HEAD = EMBED // N_HEADS
N_LAYERS = 2
SENT_LEN = 8       # sent_len == max_len of PositionalEnc
BATCH = 2
LN_EPS = 1e-5      # nn.LayerNorm default
LANE_PAD = 128     # lane-dense output / slab width

# ---- packed parameter slab layout (rows x 128 lanes, all offsets 8-row aligned
#      for the big blocks, every entry starts at lane 0) ----
R_WQKV = 0                              # (EMBED, 3*EMBED)   fused QKV weight, [in, out]
R_WO = R_WQKV + EMBED                   # (EMBED, EMBED)     attention out-proj
R_W1 = R_WO + EMBED                     # (EMBED, HIDDEN)    FFN linear1
R_W2 = R_W1 + EMBED                     # (HIDDEN, EMBED)    FFN linear2
R_VEC = R_W2 + HIDDEN                   # 8 rows of 1-D params
(V_BQKV, V_BO, V_LN1W, V_LN1B, V_B1, V_B2, V_LN2W, V_LN2B) = range(8)
LAYER_ROWS = R_VEC + 8                  # 168 rows per encoder layer

R_FCW = N_LAYERS * LAYER_ROWS           # 336: (EMBED, LANE_PAD) fc weight (lane padded)
R_FCB = R_FCW + EMBED                   # 368: fc bias row (lane padded)
R_PE = R_FCB + 8                        # 376: (BATCH*SENT_LEN, EMBED) pre-tiled pos-enc
R_HSUM = R_PE + BATCH * SENT_LEN        # 392: (EMBED, EMBED) block-diag head-sum matrix
SLAB_ROWS = R_HSUM + EMBED              # 424 rows total (multiple of 8)


# ---------------- in-kernel math ----------------
def _layer_norm(y, w, b):
    # single-pass stats (var = E[y^2] - mean^2), clamped at 0 for robustness
    mu = jnp.mean(y, axis=-1, keepdims=True)
    var = jnp.maximum(jnp.mean(y * y, axis=-1, keepdims=True) - mu * mu, 0.0)
    return (y - mu) * jax.lax.rsqrt(var + LN_EPS) * w + b


def _row(p_ref, r, cols):
    return p_ref[r:r + 1, :cols]        # (1, cols) static row slice (broadcast row)


def _encoder_layer(x2, p_ref, base, hsum):
    """One post-norm nn.TransformerEncoderLayer (relu, dropout=identity) on a (B*S, E) tile."""
    e = EMBED
    w_qkv = p_ref[base + R_WQKV:base + R_WQKV + e, :3 * e]       # (E, 3E)
    wo = p_ref[base + R_WO:base + R_WO + e, :e]                  # (E, E)
    w1 = p_ref[base + R_W1:base + R_W1 + e, :HIDDEN]             # (E, H)
    w2 = p_ref[base + R_W2:base + R_W2 + HIDDEN, :e]             # (H, E)
    vb = base + R_VEC
    b_qkv = _row(p_ref, vb + V_BQKV, 3 * e)
    bo = _row(p_ref, vb + V_BO, e)
    ln1w = _row(p_ref, vb + V_LN1W, e)
    ln1b = _row(p_ref, vb + V_LN1B, e)
    b1 = _row(p_ref, vb + V_B1, HIDDEN)
    b2 = _row(p_ref, vb + V_B2, e)
    ln2w = _row(p_ref, vb + V_LN2W, e)
    ln2b = _row(p_ref, vb + V_LN2B, e)

    # ---- self-attention over the batch axis (length 2), batched over (seq, head) ----
    # fused QKV projection; the 1/sqrt(d_head) scale is pre-folded into the Q columns.
    qkv = jnp.dot(x2, w_qkv, preferred_element_type=jnp.float32) + b_qkv   # (B*S, 3E)
    q = qkv[:, :e]
    k = qkv[:, e:2 * e]
    v = qkv[:, 2 * e:3 * e]
    k0, k1 = k[:SENT_LEN], k[SENT_LEN:]            # (S, E): batch row 0 / batch row 1
    v0, v1 = v[:SENT_LEN], v[SENT_LEN:]
    dk = k1 - k0
    dv = v1 - v0

    # per-(token, head) score gap  s1 - s0 = q . (k1 - k0)  restricted to each head's
    # lanes; the segmented lane-sum is one MXU matmul with a block-diagonal ones matrix,
    # whose result is already broadcast across each head's 8 lanes.
    prod = q.reshape(BATCH, SENT_LEN, e) * dk[None]                        # (B, S, E)
    gap = jnp.dot(prod.reshape(BATCH * SENT_LEN, e), hsum,
                  preferred_element_type=jnp.float32)                      # (B*S, E)
    # length-2 softmax == sigmoid (EUP exp + approx reciprocal, no XLU reductions)
    p1 = pl.reciprocal(1.0 + jnp.exp(-gap), approx=True)                   # weight on b=1
    ctx = v0[None] + p1.reshape(BATCH, SENT_LEN, e) * dv[None]             # (B, S, E)

    attn = jnp.dot(ctx.reshape(BATCH * SENT_LEN, e), wo,
                   preferred_element_type=jnp.float32) + bo
    y = _layer_norm(x2 + attn, ln1w, ln1b)

    # ---- feed-forward (relu) + residual + LayerNorm 2 ----
    h = jnp.maximum(jnp.dot(y, w1, preferred_element_type=jnp.float32) + b1, 0.0)
    ff = jnp.dot(h, w2, preferred_element_type=jnp.float32) + b2
    return _layer_norm(y + ff, ln2w, ln2b)


def _transformer_kernel(x_ref, p_ref, o_ref):
    """Fused forward: PE add -> 2 encoder layers -> mean over seq -> fc (lane-padded)."""
    hsum = p_ref[R_HSUM:R_HSUM + EMBED, :EMBED]                    # constant head-sum matrix
    # positional encoding (dropout = identity); PE is pre-tiled to the (B*S, E) layout
    t = x_ref[...] + p_ref[R_PE:R_PE + BATCH * SENT_LEN, :EMBED]
    for li in range(N_LAYERS):                                     # statically unrolled
        t = _encoder_layer(t, p_ref, li * LAYER_ROWS, hsum)

    # PyTorch: pooled = trans_out.mean(1)  == mean over the seq axis in our layout
    pooled = jnp.mean(t.reshape(BATCH, SENT_LEN, EMBED), axis=1)   # (B, E)

    # lane-dense (B, 128) output slab; real logits live in lanes [0, OUT_DIM)
    fc_w = p_ref[R_FCW:R_FCW + EMBED, :]                           # (E, 128)
    fc_b = p_ref[R_FCB:R_FCB + 1, :]                               # (1, 128)
    o_ref[...] = jnp.dot(pooled, fc_w, preferred_element_type=jnp.float32) + fc_b


def _vmem():
    return pl.BlockSpec(memory_space=pltpu.MemorySpace.VMEM)


def forward_pallas(x, slab):
    """x: (BATCH, SENT_LEN, EMBED) -- same calling convention as TransformerNet.forward.
    Returns the lane-dense (BATCH, 128) logits slab; logits are lanes [0, OUT_DIM)."""
    x2 = x.reshape(BATCH * SENT_LEN, EMBED).astype(jnp.float32)    # free reshape, no transpose
    return pl.pallas_call(
        _transformer_kernel,
        out_shape=jax.ShapeDtypeStruct((BATCH, LANE_PAD), jnp.float32),
        in_specs=[_vmem(), _vmem()],
        out_specs=_vmem(),
        cost_estimate=pl.CostEstimate(
            flops=610_000, transcendentals=2_304,
            bytes_accessed=SLAB_ROWS * LANE_PAD * 4 + 2 * BATCH * SENT_LEN * EMBED * 4),
    )(x2, slab)


# ---------------- pure-JAX reference (validation only, mirrors PyTorch) ----------------
def _ref_layer_norm(y, w, b):
    mu = jnp.mean(y, axis=-1, keepdims=True)
    var = jnp.mean((y - mu) ** 2, axis=-1, keepdims=True)
    return (y - mu) * jax.lax.rsqrt(var + LN_EPS) * w + b


def _ref_encoder_layer(x, p):
    # x: (B, S, E); attention runs over the batch axis (batch_first=False semantics)
    b, s, e = x.shape
    d = e // N_HEADS
    scale = 1.0 / math.sqrt(d)
    x2 = x.reshape(b * s, e)
    qkv = x2 @ p["in_w"].T + p["in_b"]
    q = qkv[:, :e].reshape(b, s, N_HEADS, d)
    k = qkv[:, e:2 * e].reshape(b, s, N_HEADS, d)
    v = qkv[:, 2 * e:].reshape(b, s, N_HEADS, d)
    sc = jnp.einsum("ashd,bshd->shab", q, k) * scale
    pa = jax.nn.softmax(sc, axis=-1)
    ctx = jnp.einsum("shab,bshd->ashd", pa, v).reshape(b * s, e)
    y = _ref_layer_norm(x2 + ctx @ p["out_w"].T + p["out_b"], p["ln1w"], p["ln1b"])
    h = jnp.maximum(y @ p["w1"].T + p["b1"], 0.0)
    y2 = _ref_layer_norm(y + h @ p["w2"].T + p["b2"], p["ln2w"], p["ln2b"])
    return y2.reshape(b, s, e)


def forward_reference(x, params):
    t = (x + params["pe"][None]).astype(jnp.float32)
    for lp in params["layers"]:
        t = _ref_encoder_layer(t, lp)
    pooled = jnp.mean(t, axis=1)
    return pooled @ params["fc_w"].T + params["fc_b"]


# ---------------- parameters, positional encoding, slab packing ----------------
def _positional_encoding(max_len, d_model):
    pos = jnp.arange(max_len, dtype=jnp.float32)[:, None]
    div = jnp.exp(jnp.arange(0, d_model, 2, dtype=jnp.float32)
                  * (-math.log(10000.0) / d_model))
    pe = jnp.zeros((max_len, d_model), jnp.float32)
    pe = pe.at[:, 0::2].set(jnp.sin(pos * div))
    pe = pe.at[:, 1::2].set(jnp.cos(pos * div))
    return pe


def _build_slab(params):
    """Pack every parameter into one (SLAB_ROWS, 128) tile-aligned f32 slab."""
    slab = jnp.zeros((SLAB_ROWS, LANE_PAD), jnp.float32)
    scale = 1.0 / math.sqrt(HEAD)
    for li, lp in enumerate(params["layers"]):
        base = li * LAYER_ROWS
        w_qkv = lp["in_w"].T                                  # (E, 3E), [in, out]
        b_qkv = lp["in_b"]
        # fold the attention scale into the Q columns / Q bias
        w_qkv = w_qkv.at[:, :EMBED].multiply(scale)
        b_qkv = b_qkv.at[:EMBED].multiply(scale)
        slab = slab.at[base + R_WQKV:base + R_WQKV + EMBED, :3 * EMBED].set(w_qkv)
        slab = slab.at[base + R_WO:base + R_WO + EMBED, :EMBED].set(lp["out_w"].T)
        slab = slab.at[base + R_W1:base + R_W1 + EMBED, :HIDDEN].set(lp["w1"].T)
        slab = slab.at[base + R_W2:base + R_W2 + HIDDEN, :EMBED].set(lp["w2"].T)
        vb = base + R_VEC
        slab = slab.at[vb + V_BQKV, :3 * EMBED].set(b_qkv)
        slab = slab.at[vb + V_BO, :EMBED].set(lp["out_b"])
        slab = slab.at[vb + V_LN1W, :EMBED].set(lp["ln1w"])
        slab = slab.at[vb + V_LN1B, :EMBED].set(lp["ln1b"])
        slab = slab.at[vb + V_B1, :HIDDEN].set(lp["b1"])
        slab = slab.at[vb + V_B2, :EMBED].set(lp["b2"])
        slab = slab.at[vb + V_LN2W, :EMBED].set(lp["ln2w"])
        slab = slab.at[vb + V_LN2B, :EMBED].set(lp["ln2b"])
    slab = slab.at[R_FCW:R_FCW + EMBED, :OUT_DIM].set(params["fc_w"].T)
    slab = slab.at[R_FCB, :OUT_DIM].set(params["fc_b"])
    # positional encoding pre-tiled to the batch-major (B*S, E) token layout
    slab = slab.at[R_PE:R_PE + BATCH * SENT_LEN, :EMBED].set(
        jnp.tile(params["pe"], (BATCH, 1)))
    # block-diagonal ones matrix: segmented per-head lane sum on the MXU
    hs = (jnp.arange(EMBED)[:, None] // HEAD) == (jnp.arange(EMBED)[None, :] // HEAD)
    slab = slab.at[R_HSUM:R_HSUM + EMBED, :EMBED].set(hs.astype(jnp.float32))
    return slab


def init_params(key):
    keys = iter(jax.random.split(key, 8 * N_LAYERS + 2))
    layers = []
    for _ in range(N_LAYERS):
        layers.append(dict(
            in_w=0.1 * jax.random.normal(next(keys), (3 * EMBED, EMBED), jnp.float32),
            in_b=0.1 * jax.random.normal(next(keys), (3 * EMBED,), jnp.float32),
            out_w=0.1 * jax.random.normal(next(keys), (EMBED, EMBED), jnp.float32),
            out_b=0.1 * jax.random.normal(next(keys), (EMBED,), jnp.float32),
            w1=0.1 * jax.random.normal(next(keys), (HIDDEN, EMBED), jnp.float32),
            b1=0.1 * jax.random.normal(next(keys), (HIDDEN,), jnp.float32),
            w2=0.1 * jax.random.normal(next(keys), (EMBED, HIDDEN), jnp.float32),
            b2=0.1 * jax.random.normal(next(keys), (EMBED,), jnp.float32),
            ln1w=jnp.ones((EMBED,), jnp.float32), ln1b=jnp.zeros((EMBED,), jnp.float32),
            ln2w=jnp.ones((EMBED,), jnp.float32), ln2b=jnp.zeros((EMBED,), jnp.float32),
        ))
    fc_w = 0.1 * jax.random.normal(next(keys), (OUT_DIM, EMBED), jnp.float32)
    fc_b = 0.1 * jax.random.normal(next(keys), (OUT_DIM,), jnp.float32)
    params = dict(layers=layers, fc_w=fc_w, fc_b=fc_b,
                  pe=_positional_encoding(SENT_LEN, EMBED))
    params["slab"] = _build_slab(params)
    return params


# ---------------- main ----------------
if __name__ == "__main__":
    key = jax.random.PRNGKey(0)
    pkey, xkey = jax.random.split(key)
    params = init_params(pkey)
    x = jax.random.normal(xkey, (BATCH, SENT_LEN, EMBED), jnp.float32)

    fwd = jax.jit(forward_pallas)
    out_pad = jax.block_until_ready(fwd(x, params["slab"]))

    # validation only: downstream consumers would read lanes [0, OUT_DIM) directly
    out = out_pad[:, :OUT_DIM]
    ref = forward_reference(x, params)
    assert out_pad.shape == (BATCH, LANE_PAD), out_pad.shape
    assert bool(jnp.all(jnp.isfinite(out)))
    assert bool(jnp.allclose(out, ref, atol=2e-2, rtol=2e-2)), (out, ref)
    print("KERNEL_OK")
</pallas_src>

<mosaic_0001>
module attributes {stable_mosaic.version = 11 : i64} {
  func.func @_transformer_kernel(%arg0: memref<16x32xf32, #tpu.memory_space<vmem>>, %arg1: memref<424x128xf32, #tpu.memory_space<vmem>>, %arg2: memref<2x128xf32, #tpu.memory_space<vmem>>) attributes {dimension_semantics = [], scalar_prefetch = 0 : i64, scratch_operands = 0 : i64, tpu.core_type = #tpu.core_type<tc>} {
    %c392 = arith.constant 392 : index
    %c0 = arith.constant 0 : index
    %0 = vector.load %arg1[%c392, %c0] : memref<424x128xf32, #tpu.memory_space<vmem>>, vector<32x32xf32>
    %c0_0 = arith.constant 0 : index
    %c0_1 = arith.constant 0 : index
    %1 = vector.load %arg0[%c0_0, %c0_1] : memref<16x32xf32, #tpu.memory_space<vmem>>, vector<16x32xf32>
    %c376 = arith.constant 376 : index
    %c0_2 = arith.constant 0 : index
    %2 = vector.load %arg1[%c376, %c0_2] : memref<424x128xf32, #tpu.memory_space<vmem>>, vector<16x32xf32>
    %3 = arith.addf %1, %2 : vector<16x32xf32>
    %c0_3 = arith.constant 0 : index
    %c0_4 = arith.constant 0 : index
    %4 = vector.load %arg1[%c0_3, %c0_4] : memref<424x128xf32, #tpu.memory_space<vmem>>, vector<32x96xf32>
    %c32 = arith.constant 32 : index
    %c0_5 = arith.constant 0 : index
    %5 = vector.load %arg1[%c32, %c0_5] : memref<424x128xf32, #tpu.memory_space<vmem>>, vector<32x32xf32>
    %c64 = arith.constant 64 : index
    %c0_6 = arith.constant 0 : index
    %6 = vector.load %arg1[%c64, %c0_6] : memref<424x128xf32, #tpu.memory_space<vmem>>, vector<32x64xf32>
    %c96 = arith.constant 96 : index
    %c0_7 = arith.constant 0 : index
    %7 = vector.load %arg1[%c96, %c0_7] : memref<424x128xf32, #tpu.memory_space<vmem>>, vector<64x32xf32>
    %c160 = arith.constant 160 : index
    %c0_8 = arith.constant 0 : index
    %8 = vector.load %arg1[%c160, %c0_8] : memref<424x128xf32, #tpu.memory_space<vmem>>, vector<1x96xf32>
    %c161 = arith.constant 161 : index
    %c0_9 = arith.constant 0 : index
    %9 = vector.load %arg1[%c161, %c0_9] : memref<424x128xf32, #tpu.memory_space<vmem>>, vector<1x32xf32>
    %c162 = arith.constant 162 : index
    %c0_10 = arith.constant 0 : index
    %10 = vector.load %arg1[%c162, %c0_10] : memref<424x128xf32, #tpu.memory_space<vmem>>, vector<1x32xf32>
    %c163 = arith.constant 163 : index
    %c0_11 = arith.constant 0 : index
    %11 = vector.load %arg1[%c163, %c0_11] : memref<424x128xf32, #tpu.memory_space<vmem>>, vector<1x32xf32>
    %c164 = arith.constant 164 : index
    %c0_12 = arith.constant 0 : index
    %12 = vector.load %arg1[%c164, %c0_12] : memref<424x128xf32, #tpu.memory_space<vmem>>, vector<1x64xf32>
    %c165 = arith.constant 165 : index
    %c0_13 = arith.constant 0 : index
    %13 = vector.load %arg1[%c165, %c0_13] : memref<424x128xf32, #tpu.memory_space<vmem>>, vector<1x32xf32>
    %c166 = arith.constant 166 : index
    %c0_14 = arith.constant 0 : index
    %14 = vector.load %arg1[%c166, %c0_14] : memref<424x128xf32, #tpu.memory_space<vmem>>, vector<1x32xf32>
    %c167 = arith.constant 167 : index
    %c0_15 = arith.constant 0 : index
    %15 = vector.load %arg1[%c167, %c0_15] : memref<424x128xf32, #tpu.memory_space<vmem>>, vector<1x32xf32>
    %cst = arith.constant dense<0.000000e+00> : vector<16x96xf32>
    %16 = tpu.matmul %3, %4, %cst {dimension_numbers = #tpu.dot_dimension_numbers<[1], [0], [0], [1], [0, 0, 1, 1], [], []>} : vector<16x32xf32>, vector<32x96xf32>, vector<16x96xf32> -> vector<16x96xf32>
    %17 = vector.broadcast %8 : vector<1x96xf32> to vector<16x96xf32>
    %18 = arith.addf %16, %17 : vector<16x96xf32>
    %19 = vector.extract_strided_slice %18 {offsets = [0, 0], sizes = [16, 32], strides = [1, 1]} : vector<16x96xf32> to vector<16x32xf32>
    %20 = vector.extract_strided_slice %18 {offsets = [0, 32], sizes = [16, 32], strides = [1, 1]} : vector<16x96xf32> to vector<16x32xf32>
    %21 = vector.extract_strided_slice %18 {offsets = [0, 64], sizes = [16, 32], strides = [1, 1]} : vector<16x96xf32> to vector<16x32xf32>
    %22 = vector.extract_strided_slice %20 {offsets = [0, 0], sizes = [8, 32], strides = [1, 1]} : vector<16x32xf32> to vector<8x32xf32>
    %23 = vector.extract_strided_slice %20 {offsets = [8, 0], sizes = [8, 32], strides = [1, 1]} : vector<16x32xf32> to vector<8x32xf32>
    %24 = vector.extract_strided_slice %21 {offsets = [0, 0], sizes = [8, 32], strides = [1, 1]} : vector<16x32xf32> to vector<8x32xf32>
    %25 = vector.extract_strided_slice %21 {offsets = [8, 0], sizes = [8, 32], strides = [1, 1]} : vector<16x32xf32> to vector<8x32xf32>
    %26 = arith.subf %23, %22 : vector<8x32xf32>
    %27 = arith.subf %25, %24 : vector<8x32xf32>
    %28 = vector.shape_cast %19 : vector<16x32xf32> to vector<2x8x32xf32>
    %29 = vector.shape_cast %26 : vector<8x32xf32> to vector<1x8x32xf32>
    %30 = vector.broadcast %29 : vector<1x8x32xf32> to vector<2x8x32xf32>
    %31 = arith.mulf %28, %30 : vector<2x8x32xf32>
    %32 = vector.shape_cast %31 : vector<2x8x32xf32> to vector<16x32xf32>
    %cst_16 = arith.constant dense<0.000000e+00> : vector<16x32xf32>
    %33 = tpu.matmul %32, %0, %cst_16 {dimension_numbers = #tpu.dot_dimension_numbers<[1], [0], [0], [1], [0, 0, 1, 1], [], []>} : vector<16x32xf32>, vector<32x32xf32>, vector<16x32xf32> -> vector<16x32xf32>
    %cst_17 = arith.constant 0.000000e+00 : f32
    %34 = vector.broadcast %cst_17 : f32 to vector<16x32xf32>
    %35 = arith.subf %34, %33 : vector<16x32xf32>
    %36 = math.exp %35 : vector<16x32xf32>
    %cst_18 = arith.constant 1.000000e+00 : f32
    %37 = vector.broadcast %cst_18 : f32 to vector<16x32xf32>
    %38 = arith.addf %37, %36 : vector<16x32xf32>
    %39 = tpu.reciprocal %38 {approx = true} : vector<16x32xf32> -> vector<16x32xf32>
    %40 = vector.shape_cast %24 : vector<8x32xf32> to vector<1x8x32xf32>
    %41 = vector.shape_cast %39 : vector<16x32xf32> to vector<2x8x32xf32>
    %42 = vector.shape_cast %27 : vector<8x32xf32> to vector<1x8x32xf32>
    %43 = vector.broadcast %42 : vector<1x8x32xf32> to vector<2x8x32xf32>
    %44 = arith.mulf %41, %43 : vector<2x8x32xf32>
    %45 = vector.broadcast %40 : vector<1x8x32xf32> to vector<2x8x32xf32>
    %46 = arith.addf %45, %44 : vector<2x8x32xf32>
    %47 = vector.shape_cast %46 : vector<2x8x32xf32> to vector<16x32xf32>
    %cst_19 = arith.constant dense<0.000000e+00> : vector<16x32xf32>
    %48 = tpu.matmul %47, %5, %cst_19 {dimension_numbers = #tpu.dot_dimension_numbers<[1], [0], [0], [1], [0, 0, 1, 1], [], []>} : vector<16x32xf32>, vector<32x32xf32>, vector<16x32xf32> -> vector<16x32xf32>
    %49 = vector.broadcast %9 : vector<1x32xf32> to vector<16x32xf32>
    %50 = arith.addf %48, %49 : vector<16x32xf32>
    %51 = arith.addf %3, %50 : vector<16x32xf32>
    %cst_20 = arith.constant dense<0.000000e+00> : vector<16xf32>
    %52 = vector.multi_reduction <add>, %51, %cst_20 [1] : vector<16x32xf32> to vector<16xf32>
    %53 = vector.shape_cast %52 : vector<16xf32> to vector<16x1xf32>
    %cst_21 = arith.constant 3.200000e+01 : f32
    %54 = vector.broadcast %cst_21 : f32 to vector<16x1xf32>
    %55 = arith.divf %53, %54 : vector<16x1xf32>
    %56 = arith.mulf %51, %51 : vector<16x32xf32>
    %cst_22 = arith.constant dense<0.000000e+00> : vector<16xf32>
    %57 = vector.multi_reduction <add>, %56, %cst_22 [1] : vector<16x32xf32> to vector<16xf32>
    %58 = vector.shape_cast %57 : vector<16xf32> to vector<16x1xf32>
    %cst_23 = arith.constant 3.200000e+01 : f32
    %59 = vector.broadcast %cst_23 : f32 to vector<16x1xf32>
    %60 = arith.divf %58, %59 : vector<16x1xf32>
    %61 = arith.mulf %55, %55 : vector<16x1xf32>
    %62 = arith.subf %60, %61 : vector<16x1xf32>
    %cst_24 = arith.constant 0.000000e+00 : f32
    %63 = vector.broadcast %cst_24 : f32 to vector<16x1xf32>
    %64 = arith.maximumf %62, %63 : vector<16x1xf32>
    %65 = vector.broadcast %55 : vector<16x1xf32> to vector<16x32xf32>
    %66 = arith.subf %51, %65 : vector<16x32xf32>
    %cst_25 = arith.constant 9.99999974E-6 : f32
    %67 = vector.broadcast %cst_25 : f32 to vector<16x1xf32>
    %68 = arith.addf %64, %67 : vector<16x1xf32>
    %69 = math.rsqrt %68 : vector<16x1xf32>
    %70 = vector.broadcast %69 : vector<16x1xf32> to vector<16x32xf32>
    %71 = arith.mulf %66, %70 : vector<16x32xf32>
    %72 = vector.broadcast %10 : vector<1x32xf32> to vector<16x32xf32>
    %73 = arith.mulf %71, %72 : vector<16x32xf32>
    %74 = vector.broadcast %11 : vector<1x32xf32> to vector<16x32xf32>
    %75 = arith.addf %73, %74 : vector<16x32xf32>
    %cst_26 = arith.constant dense<0.000000e+00> : vector<16x64xf32>
    %76 = tpu.matmul %75, %6, %cst_26 {dimension_numbers = #tpu.dot_dimension_numbers<[1], [0], [0], [1], [0, 0, 1, 1], [], []>} : vector<16x32xf32>, vector<32x64xf32>, vector<16x64xf32> -> vector<16x64xf32>
    %77 = vector.broadcast %12 : vector<1x64xf32> to vector<16x64xf32>
    %78 = arith.addf %76, %77 : vector<16x64xf32>
    %cst_27 = arith.constant 0.000000e+00 : f32
    %79 = vector.broadcast %cst_27 : f32 to vector<16x64xf32>
    %80 = arith.maximumf %78, %79 : vector<16x64xf32>
    %cst_28 = arith.constant dense<0.000000e+00> : vector<16x32xf32>
    %81 = tpu.matmul %80, %7, %cst_28 {dimension_numbers = #tpu.dot_dimension_numbers<[1], [0], [0], [1], [0, 0, 1, 1], [], []>} : vector<16x64xf32>, vector<64x32xf32>, vector<16x32xf32> -> vector<16x32xf32>
    %82 = vector.broadcast %13 : vector<1x32xf32> to vector<16x32xf32>
    %83 = arith.addf %81, %82 : vector<16x32xf32>
    %84 = arith.addf %75, %83 : vector<16x32xf32>
    %cst_29 = arith.constant dense<0.000000e+00> : vector<16xf32>
    %85 = vector.multi_reduction <add>, %84, %cst_29 [1] : vector<16x32xf32> to vector<16xf32>
    %86 = vector.shape_cast %85 : vector<16xf32> to vector<16x1xf32>
    %cst_30 = arith.constant 3.200000e+01 : f32
    %87 = vector.broadcast %cst_30 : f32 to vector<16x1xf32>
    %88 = arith.divf %86, %87 : vector<16x1xf32>
    %89 = arith.mulf %84, %84 : vector<16x32xf32>
    %cst_31 = arith.constant dense<0.000000e+00> : vector<16xf32>
    %90 = vector.multi_reduction <add>, %89, %cst_31 [1] : vector<16x32xf32> to vector<16xf32>
    %91 = vector.shape_cast %90 : vector<16xf32> to vector<16x1xf32>
    %cst_32 = arith.constant 3.200000e+01 : f32
    %92 = vector.broadcast %cst_32 : f32 to vector<16x1xf32>
    %93 = arith.divf %91, %92 : vector<16x1xf32>
    %94 = arith.mulf %88, %88 : vector<16x1xf32>
    %95 = arith.subf %93, %94 : vector<16x1xf32>
    %cst_33 = arith.constant 0.000000e+00 : f32
    %96 = vector.broadcast %cst_33 : f32 to vector<16x1xf32>
    %97 = arith.maximumf %95, %96 : vector<16x1xf32>
    %98 = vector.broadcast %88 : vector<16x1xf32> to vector<16x32xf32>
    %99 = arith.subf %84, %98 : vector<16x32xf32>
    %cst_34 = arith.constant 9.99999974E-6 : f32
    %100 = vector.broadcast %cst_34 : f32 to vector<16x1xf32>
    %101 = arith.addf %97, %100 : vector<16x1xf32>
    %102 = math.rsqrt %101 : vector<16x1xf32>
    %103 = vector.broadcast %102 : vector<16x1xf32> to vector<16x32xf32>
    %104 = arith.mulf %99, %103 : vector<16x32xf32>
    %105 = vector.broadcast %14 : vector<1x32xf32> to vector<16x32xf32>
    %106 = arith.mulf %104, %105 : vector<16x32xf32>
    %107 = vector.broadcast %15 : vector<1x32xf32> to vector<16x32xf32>
    %108 = arith.addf %106, %107 : vector<16x32xf32>
    %c168 = arith.constant 168 : index
    %c0_35 = arith.constant 0 : index
    %109 = vector.load %arg1[%c168, %c0_35] : memref<424x128xf32, #tpu.memory_space<vmem>>, vector<32x96xf32>
    %c200 = arith.constant 200 : index
    %c0_36 = arith.constant 0 : index
    %110 = vector.load %arg1[%c200, %c0_36] : memref<424x128xf32, #tpu.memory_space<vmem>>, vector<32x32xf32>
    %c232 = arith.constant 232 : index
    %c0_37 = arith.constant 0 : index
    %111 = vector.load %arg1[%c232, %c0_37] : memref<424x128xf32, #tpu.memory_space<vmem>>, vector<32x64xf32>
    %c264 = arith.constant 264 : index
    %c0_38 = arith.constant 0 : index
    %112 = vector.load %arg1[%c264, %c0_38] : memref<424x128xf32, #tpu.memory_space<vmem>>, vector<64x32xf32>
    %c328 = arith.constant 328 : index
    %c0_39 = arith.constant 0 : index
    %113 = vector.load %arg1[%c328, %c0_39] : memref<424x128xf32, #tpu.memory_space<vmem>>, vector<1x96xf32>
    %c329 = arith.constant 329 : index
    %c0_40 = arith.constant 0 : index
    %114 = vector.load %arg1[%c329, %c0_40] : memref<424x128xf32, #tpu.memory_space<vmem>>, vector<1x32xf32>
    %c330 = arith.constant 330 : index
    %c0_41 = arith.constant 0 : index
    %115 = vector.load %arg1[%c330, %c0_41] : memref<424x128xf32, #tpu.memory_space<vmem>>, vector<1x32xf32>
    %c331 = arith.constant 331 : index
    %c0_42 = arith.constant 0 : index
    %116 = vector.load %arg1[%c331, %c0_42] : memref<424x128xf32, #tpu.memory_space<vmem>>, vector<1x32xf32>
    %c332 = arith.constant 332 : index
    %c0_43 = arith.constant 0 : index
    %117 = vector.load %arg1[%c332, %c0_43] : memref<424x128xf32, #tpu.memory_space<vmem>>, vector<1x64xf32>
    %c333 = arith.constant 333 : index
    %c0_44 = arith.constant 0 : index
    %118 = vector.load %arg1[%c333, %c0_44] : memref<424x128xf32, #tpu.memory_space<vmem>>, vector<1x32xf32>
    %c334 = arith.constant 334 : index
    %c0_45 = arith.constant 0 : index
    %119 = vector.load %arg1[%c334, %c0_45] : memref<424x128xf32, #tpu.memory_space<vmem>>, vector<1x32xf32>
    %c335 = arith.constant 335 : index
    %c0_46 = arith.constant 0 : index
    %120 = vector.load %arg1[%c335, %c0_46] : memref<424x128xf32, #tpu.memory_space<vmem>>, vector<1x32xf32>
    %cst_47 = arith.constant dense<0.000000e+00> : vector<16x96xf32>
    %121 = tpu.matmul %108, %109, %cst_47 {dimension_numbers = #tpu.dot_dimension_numbers<[1], [0], [0], [1], [0, 0, 1, 1], [], []>} : vector<16x32xf32>, vector<32x96xf32>, vector<16x96xf32> -> vector<16x96xf32>
    %122 = vector.broadcast %113 : vector<1x96xf32> to vector<16x96xf32>
    %123 = arith.addf %121, %122 : vector<16x96xf32>
    %124 = vector.extract_strided_slice %123 {offsets = [0, 0], sizes = [16, 32], strides = [1, 1]} : vector<16x96xf32> to vector<16x32xf32>
    %125 = vector.extract_strided_slice %123 {offsets = [0, 32], sizes = [16, 32], strides = [1, 1]} : vector<16x96xf32> to vector<16x32xf32>
    %126 = vector.extract_strided_slice %123 {offsets = [0, 64], sizes = [16, 32], strides = [1, 1]} : vector<16x96xf32> to vector<16x32xf32>
    %127 = vector.extract_strided_slice %125 {offsets = [0, 0], sizes = [8, 32], strides = [1, 1]} : vector<16x32xf32> to vector<8x32xf32>
    %128 = vector.extract_strided_slice %125 {offsets = [8, 0], sizes = [8, 32], strides = [1, 1]} : vector<16x32xf32> to vector<8x32xf32>
    %129 = vector.extract_strided_slice %126 {offsets = [0, 0], sizes = [8, 32], strides = [1, 1]} : vector<16x32xf32> to vector<8x32xf32>
    %130 = vector.extract_strided_slice %126 {offsets = [8, 0], sizes = [8, 32], strides = [1, 1]} : vector<16x32xf32> to vector<8x32xf32>
    %131 = arith.subf %128, %127 : vector<8x32xf32>
    %132 = arith.subf %130, %129 : vector<8x32xf32>
    %133 = vector.shape_cast %124 : vector<16x32xf32> to vector<2x8x32xf32>
    %134 = vector.shape_cast %131 : vector<8x32xf32> to vector<1x8x32xf32>
    %135 = vector.broadcast %134 : vector<1x8x32xf32> to vector<2x8x32xf32>
    %136 = arith.mulf %133, %135 : vector<2x8x32xf32>
    %137 = vector.shape_cast %136 : vector<2x8x32xf32> to vector<16x32xf32>
    %cst_48 = arith.constant dense<0.000000e+00> : vector<16x32xf32>
    %138 = tpu.matmul %137, %0, %cst_48 {dimension_numbers = #tpu.dot_dimension_numbers<[1], [0], [0], [1], [0, 0, 1, 1], [], []>} : vector<16x32xf32>, vector<32x32xf32>, vector<16x32xf32> -> vector<16x32xf32>
    %cst_49 = arith.constant 0.000000e+00 : f32
    %139 = vector.broadcast %cst_49 : f32 to vector<16x32xf32>
    %140 = arith.subf %139, %138 : vector<16x32xf32>
    %141 = math.exp %140 : vector<16x32xf32>
    %cst_50 = arith.constant 1.000000e+00 : f32
    %142 = vector.broadcast %cst_50 : f32 to vector<16x32xf32>
    %143 = arith.addf %142, %141 : vector<16x32xf32>
    %144 = tpu.reciprocal %143 {approx = true} : vector<16x32xf32> -> vector<16x32xf32>
    %145 = vector.shape_cast %129 : vector<8x32xf32> to vector<1x8x32xf32>
    %146 = vector.shape_cast %144 : vector<16x32xf32> to vector<2x8x32xf32>
    %147 = vector.shape_cast %132 : vector<8x32xf32> to vector<1x8x32xf32>
    %148 = vector.broadcast %147 : vector<1x8x32xf32> to vector<2x8x32xf32>
    %149 = arith.mulf %146, %148 : vector<2x8x32xf32>
    %150 = vector.broadcast %145 : vector<1x8x32xf32> to vector<2x8x32xf32>
    %151 = arith.addf %150, %149 : vector<2x8x32xf32>
    %152 = vector.shape_cast %151 : vector<2x8x32xf32> to vector<16x32xf32>
    %cst_51 = arith.constant dense<0.000000e+00> : vector<16x32xf32>
    %153 = tpu.matmul %152, %110, %cst_51 {dimension_numbers = #tpu.dot_dimension_numbers<[1], [0], [0], [1], [0, 0, 1, 1], [], []>} : vector<16x32xf32>, vector<32x32xf32>, vector<16x32xf32> -> vector<16x32xf32>
    %154 = vector.broadcast %114 : vector<1x32xf32> to vector<16x32xf32>
    %155 = arith.addf %153, %154 : vector<16x32xf32>
    %156 = arith.addf %108, %155 : vector<16x32xf32>
    %cst_52 = arith.constant dense<0.000000e+00> : vector<16xf32>
    %157 = vector.multi_reduction <add>, %156, %cst_52 [1] : vector<16x32xf32> to vector<16xf32>
    %158 = vector.shape_cast %157 : vector<16xf32> to vector<16x1xf32>
    %cst_53 = arith.constant 3.200000e+01 : f32
    %159 = vector.broadcast %cst_53 : f32 to vector<16x1xf32>
    %160 = arith.divf %158, %159 : vector<16x1xf32>
    %161 = arith.mulf %156, %156 : vector<16x32xf32>
    %cst_54 = arith.constant dense<0.000000e+00> : vector<16xf32>
    %162 = vector.multi_reduction <add>, %161, %cst_54 [1] : vector<16x32xf32> to vector<16xf32>
    %163 = vector.shape_cast %162 : vector<16xf32> to vector<16x1xf32>
    %cst_55 = arith.constant 3.200000e+01 : f32
    %164 = vector.broadcast %cst_55 : f32 to vector<16x1xf32>
    %165 = arith.divf %163, %164 : vector<16x1xf32>
    %166 = arith.mulf %160, %160 : vector<16x1xf32>
    %167 = arith.subf %165, %166 : vector<16x1xf32>
    %cst_56 = arith.constant 0.000000e+00 : f32
    %168 = vector.broadcast %cst_56 : f32 to vector<16x1xf32>
    %169 = arith.maximumf %167, %168 : vector<16x1xf32>
    %170 = vector.broadcast %160 : vector<16x1xf32> to vector<16x32xf32>
    %171 = arith.subf %156, %170 : vector<16x32xf32>
    %cst_57 = arith.constant 9.99999974E-6 : f32
    %172 = vector.broadcast %cst_57 : f32 to vector<16x1xf32>
    %173 = arith.addf %169, %172 : vector<16x1xf32>
    %174 = math.rsqrt %173 : vector<16x1xf32>
    %175 = vector.broadcast %174 : vector<16x1xf32> to vector<16x32xf32>
    %176 = arith.mulf %171, %175 : vector<16x32xf32>
    %177 = vector.broadcast %115 : vector<1x32xf32> to vector<16x32xf32>
    %178 = arith.mulf %176, %177 : vector<16x32xf32>
    %179 = vector.broadcast %116 : vector<1x32xf32> to vector<16x32xf32>
    %180 = arith.addf %178, %179 : vector<16x32xf32>
    %cst_58 = arith.constant dense<0.000000e+00> : vector<16x64xf32>
    %181 = tpu.matmul %180, %111, %cst_58 {dimension_numbers = #tpu.dot_dimension_numbers<[1], [0], [0], [1], [0, 0, 1, 1], [], []>} : vector<16x32xf32>, vector<32x64xf32>, vector<16x64xf32> -> vector<16x64xf32>
    %182 = vector.broadcast %117 : vector<1x64xf32> to vector<16x64xf32>
    %183 = arith.addf %181, %182 : vector<16x64xf32>
    %cst_59 = arith.constant 0.000000e+00 : f32
    %184 = vector.broadcast %cst_59 : f32 to vector<16x64xf32>
    %185 = arith.maximumf %183, %184 : vector<16x64xf32>
    %cst_60 = arith.constant dense<0.000000e+00> : vector<16x32xf32>
    %186 = tpu.matmul %185, %112, %cst_60 {dimension_numbers = #tpu.dot_dimension_numbers<[1], [0], [0], [1], [0, 0, 1, 1], [], []>} : vector<16x64xf32>, vector<64x32xf32>, vector<16x32xf32> -> vector<16x32xf32>
    %187 = vector.broadcast %118 : vector<1x32xf32> to vector<16x32xf32>
    %188 = arith.addf %186, %187 : vector<16x32xf32>
    %189 = arith.addf %180, %188 : vector<16x32xf32>
    %cst_61 = arith.constant dense<0.000000e+00> : vector<16xf32>
    %190 = vector.multi_reduction <add>, %189, %cst_61 [1] : vector<16x32xf32> to vector<16xf32>
    %191 = vector.shape_cast %190 : vector<16xf32> to vector<16x1xf32>
    %cst_62 = arith.constant 3.200000e+01 : f32
    %192 = vector.broadcast %cst_62 : f32 to vector<16x1xf32>
    %193 = arith.divf %191, %192 : vector<16x1xf32>
    %194 = arith.mulf %189, %189 : vector<16x32xf32>
    %cst_63 = arith.constant dense<0.000000e+00> : vector<16xf32>
    %195 = vector.multi_reduction <add>, %194, %cst_63 [1] : vector<16x32xf32> to vector<16xf32>
    %196 = vector.shape_cast %195 : vector<16xf32> to vector<16x1xf32>
    %cst_64 = arith.constant 3.200000e+01 : f32
    %197 = vector.broadcast %cst_64 : f32 to vector<16x1xf32>
    %198 = arith.divf %196, %197 : vector<16x1xf32>
    %199 = arith.mulf %193, %193 : vector<16x1xf32>
    %200 = arith.subf %198, %199 : vector<16x1xf32>
    %cst_65 = arith.constant 0.000000e+00 : f32
    %201 = vector.broadcast %cst_65 : f32 to vector<16x1xf32>
    %202 = arith.maximumf %200, %201 : vector<16x1xf32>
    %203 = vector.broadcast %193 : vector<16x1xf32> to vector<16x32xf32>
    %204 = arith.subf %189, %203 : vector<16x32xf32>
    %cst_66 = arith.constant 9.99999974E-6 : f32
    %205 = vector.broadcast %cst_66 : f32 to vector<16x1xf32>
    %206 = arith.addf %202, %205 : vector<16x1xf32>
    %207 = math.rsqrt %206 : vector<16x1xf32>
    %208 = vector.broadcast %207 : vector<16x1xf32> to vector<16x32xf32>
    %209 = arith.mulf %204, %208 : vector<16x32xf32>
    %210 = vector.broadcast %119 : vector<1x32xf32> to vector<16x32xf32>
    %211 = arith.mulf %209, %210 : vector<16x32xf32>
    %212 = vector.broadcast %120 : vector<1x32xf32> to vector<16x32xf32>
    %213 = arith.addf %211, %212 : vector<16x32xf32>
    %214 = vector.shape_cast %213 : vector<16x32xf32> to vector<2x8x32xf32>
    %cst_67 = arith.constant dense<0.000000e+00> : vector<2x32xf32>
    %215 = vector.multi_reduction <add>, %214, %cst_67 [1] : vector<2x8x32xf32> to vector<2x32xf32>
    %cst_68 = arith.constant 8.000000e+00 : f32
    %216 = vector.broadcast %cst_68 : f32 to vector<2x32xf32>
    %217 = arith.divf %215, %216 : vector<2x32xf32>
    %c336 = arith.constant 336 : index
    %c0_69 = arith.constant 0 : index
    %218 = vector.load %arg1[%c336, %c0_69] : memref<424x128xf32, #tpu.memory_space<vmem>>, vector<32x128xf32>
    %c368 = arith.constant 368 : index
    %c0_70 = arith.constant 0 : index
    %219 = vector.load %arg1[%c368, %c0_70] : memref<424x128xf32, #tpu.memory_space<vmem>>, vector<1x128xf32>
    %cst_71 = arith.constant dense<0.000000e+00> : vector<2x128xf32>
    %220 = tpu.matmul %217, %218, %cst_71 {dimension_numbers = #tpu.dot_dimension_numbers<[1], [0], [0], [1], [0, 0, 1, 1], [], []>} : vector<2x32xf32>, vector<32x128xf32>, vector<2x128xf32> -> vector<2x128xf32>
    %221 = vector.broadcast %219 : vector<1x128xf32> to vector<2x128xf32>
    %222 = arith.addf %220, %221 : vector<2x128xf32>
    %c0_72 = arith.constant 0 : index
    %c0_73 = arith.constant 0 : index
    %223 = vector.load %arg2[%c0_72, %c0_73] : memref<2x128xf32, #tpu.memory_space<vmem>>, vector<2x128xf32>
    tpu.vector_store %arg2[%c0_72, %c0_73], %222 {strides = array<i32>} : memref<2x128xf32, #tpu.memory_space<vmem>>, vector<2x128xf32>,
    return
  }
}

</mosaic_0001>

<bundles_post_ra>
// kernel: forward_pallas.1
= control target key start
LH: loop header
LB: loop body
LE: loop exit
PB: predicated region body
PF: predicated region fallthrough
CT: control target
= control target key end

     0   :  { %7 = vsyncpa [#allocation3], 0  ;;  %s1946_s0 = inlined_call_operand.hbm [shape: f32[16,32], index: 0, kind: input, shape index: {}]   ;;  %s1947_s1 = inlined_call_operand.hbm [shape: f32[424,128], index: 1, kind: input, shape index: {}]   ;;  %s1948_s2 = inlined_call_operand.hbm [shape: f32[2,128], index: 2, kind: output, shape index: {}]  }
   0x1   :  { %8 = vsyncpa [#allocation6], 0 }
   0x2   :  { %9 = vsyncpa [#allocation4], 0  ;;  %s1794_s9 = smov [#allocation2]   ;;  %s1722_s13 = scalar_lea.hbm %s1946_s0, 256 }
   0x3   :  { %s15_s10 = sshll.u32 %s1794_s9, 4  ;;  %p1723_p0 = scmp.ne.s32.totalorder %s1946_s0, %s1722_s13  ;;  %s16_s10 = int_to_ptr.vmem [resolvable:$true] %s15_s10 }
   0x4   :  { %p1726_p1 = scmp.lt.u32.totalorder %s1722_s13, %s1946_s0 }
   0x6   :  { %p1728_p2 = pnand %p1726_p1, %p1723_p0 }
   0x8   :  { %1731 = shalt.err (!%p1728_p2)
}
   0x9   :  { %s1732_s18 = scalar_lea.vmem %s16_s10, 256  ;;  %p1737_p4 = scmp.lt.s32.totalorder %s16_s10, %s16_s10 }
   0xa   :  { %p1733_p3 = scmp.ne.s32.totalorder %s16_s10, %s1732_s18  ;;  %p1738_p5 = scmp.lt.s32.totalorder %s1732_s18, %s1732_s18 }
   0xc   :  { %p1739_p6 = por %p1738_p5, %p1737_p4 }
   0xe   :  { %p1740_p7 = pnand %p1739_p6, %p1733_p3 }
  0x10   :  { %1743 = shalt.err (!%p1740_p7)
}
  0x11   :  { %s1795_s19 = smov 128   ;;  %s1796_s20 = smov 8  }
  0x12   :  { %21 = dma.hbm_to_vmem [thread:$0]  %s1946_s0, 256, %s16_s10, [#allocation3], %s1795_s19, %s1795_s19, %s1796_s20  }
  0x13   :  { %s1797_s23 = smov [#allocation5]   ;;  %s1744_s27 = scalar_lea.hbm %s1947_s1, 6784 }
  0x14   :  { %s27_s24 = sshll.u32 %s1797_s23, 4  ;;  %p1745_p8 = scmp.ne.s32.totalorder %s1947_s1, %s1744_s27  ;;  %s28_s24 = int_to_ptr.vmem [resolvable:$true] %s27_s24 }
  0x15   :  { %p1748_p9 = scmp.lt.u32.totalorder %s1744_s27, %s1947_s1 }
  0x17   :  { %p1750_p10 = pnand %p1748_p9, %p1745_p8 }
  0x19   :  { %1753 = shalt.err (!%p1750_p10)
}
  0x1a   :  { %s1754_s4 = scalar_lea.vmem %s28_s24, 6784  ;;  %p1759_p12 = scmp.lt.s32.totalorder %s28_s24, %s28_s24 }
  0x1b   :  { %p1755_p11 = scmp.ne.s32.totalorder %s28_s24, %s1754_s4  ;;  %p1760_p13 = scmp.lt.s32.totalorder %s1754_s4, %s1754_s4 }
  0x1d   :  { %p1761_p0 = por %p1760_p13, %p1759_p12 }
  0x1f   :  { %p1762_p1 = pnand %p1761_p0, %p1755_p11 }
  0x21   :  { %1765 = shalt.err (!%p1762_p1)
}
  0x22   :  { %33 = dma.hbm_to_vmem [thread:$0]  %s1947_s1, 6784, %s28_s24, [#allocation6], %s1795_s19, %s1795_s19, %s1796_s20  }
  0x23   :  { %1788 = dma.done.wait [#allocation3], 256  }
  0x24   :  { %1789 = vsyncadd [#allocation3], 4294967040 }
  0x25   :  { %1790 = dma.done.wait [#allocation6], 6784  }
  0x26   :  { %1791 = vsyncadd [#allocation6], 4294960512  ;;  %v50_v0 = vld [vmem:[#allocation5] sm:$0xff]  ;;  %v51_v1 = vld [vmem:[#allocation5 + $0x8] sm:$0xff]  ;;  %vm82_vm0 = vcmask 261120   ;;  %s1798_s1 = smov 96  }
  0x27   :  { %v52_v2 = vld [vmem:[#allocation5 + $0x10] sm:$0xff]  ;;  %v1578_v3 = vpack.c.bf16 %v51_v1, %v50_v0  ;;  %v53_v4 = vld [vmem:[#allocation5 + $0x18] sm:$0xff]  ;;  %v47_v10 = vld [vmem:[#allocation5 + $0x180] sm:$0xff]  ;;  %s1799_s6 = smov 64   ;;  %vm504_vm1 = vcmask 523264   ;;  %vm1801_vm2 = vmmov 0  }
  0x28   :  { %v44_v5 = vld [vmem:[#allocation2] sm:$0xff]  ;;  %v46_v6 = vld [vmem:[#allocation5 + $0x178] sm:$0xff]  ;;  %v1582_v7 = vpack.c.bf16 %v53_v4, %v52_v2  ;;  %v40_v12 = vld [vmem:[#allocation5 + $0x188] sm:$0xff]  ;;  %vm1239_vm3 = vcmask 1041409   ;;  %s1803_s7 = smov [#allocation7]  }
  0x29   :  { %v1843_v8 = vadd.f32 %v46_v6, %v44_v5  ;;  %1579 = vmatprep.subr.bf16.mxu0 %v1578_v3  ;;  %v45_v9 = vld [vmem:[#allocation2 + $0x8] sm:$0xff]  ;;  %v41_v13 = vld [vmem:[#allocation5 + $0x190] sm:$0xff]  ;;  %v43_v16 = vld [vmem:[#allocation5 + $0x1a0] sm:$0xff]  ;;  %s1320_s8 = sshll.u32 %s1803_s7, 4  ;;  %s1321_s8 = int_to_ptr.vmem [resolvable:$true] %s1320_s8 }
  0x2a   :  { %1581 = vmatpush3.bf16.msra.mxu0 %v1578_v3  ;;  %v1847_v11 = vadd.f32 %v47_v10, %v45_v9  ;;  %v1851_v14 = vpack.c.bf16 %v41_v13, %v40_v12  ;;  %v42_v15 = vld [vmem:[#allocation5 + $0x198] sm:$0xff]  ;;  %v1330_v18 = vld [vmem:[#allocation5 + $0xa0] ss:$0 sm:$0xff]  ;;  %v55_v38 = vld [vmem:[#allocation5 + $0x28] sm:$0xff]  ;;  %s1766_s9 = scalar_lea.vmem %s1321_s8, 32  ;;  %p1771_p3 = scmp.lt.s32.totalorder %s1321_s8, %s1321_s8 }
  0x2b   :  { %1449 = vmatprep.mubr.msk.f32.mxu0 %vm82_vm0, %v1843_v8  ;;  %1583 = vmatprep.subr.bf16.mxu0 %v1582_v7  ;;  %v1855_v17 = vpack.c.bf16 %v43_v16, %v42_v15  ;;  %v54_v37 = vld [vmem:[#allocation5 + $0x20] sm:$0xff]  ;;  %v56_v45 = vld [vmem:[#allocation5 + $0x30] sm:$0xff]  ;;  %v57_v46 = vld [vmem:[#allocation5 + $0x38] sm:$0xff]  ;;  %p1767_p2 = scmp.ne.s32.totalorder %s1321_s8, %s1766_s9  ;;  %p1772_p4 = scmp.lt.s32.totalorder %s1766_s9, %s1766_s9 }
  0x2c   :  { %1587 = vmatprep.subr.bf16.mxu1 %v1851_v14  ;;  %v1594_v39 = vpack.c.bf16 %v55_v38, %v54_v37  ;;  %v1598_v47 = vpack.c.bf16 %v57_v46, %v56_v45  ;;  %v1335_v54 = vld [vmem:[#allocation5 + $0xa1] ss:$0 sm:$0xff]  ;;  %v59_v4 = vld [vmem:[#allocation5 + $0x48] sm:$0xff]  ;;  %v60_v5 = vld [vmem:[#allocation5 + $0x50] sm:$0xff] }
  0x2d   :  { %1589 = vmatpush3.bf16.msra.mxu1 %v1851_v14  ;;  %v58_v3 = vld [vmem:[#allocation5 + $0x40] sm:$0xff]  ;;  %v63_v10 = vld [vmem:[#allocation5 + $0x68] sm:$0xff]  ;;  %v65_v13 = vld [vmem:[#allocation5 + $0x78] sm:$0xff]  ;;  %p1773_p5 = por %p1772_p4, %p1771_p3 }
  0x2e   :  { %1585 = vmatpush3.bf16.msra.mxu0 %v1582_v7  ;;  %1591 = vmatprep.subr.bf16.mxu1 %v1855_v17  ;;  %v1602_v6 = vpack.c.bf16 %v59_v4, %v58_v3  ;;  %v61_v7 = vld [vmem:[#allocation5 + $0x58] sm:$0xff]  ;;  %v62_v9 = vld [vmem:[#allocation5 + $0x60] sm:$0xff] }
  0x2f   :  { %1595 = vmatprep.subr.bf16.mxu0 %v1594_v39  ;;  %v1610_v12 = vpack.c.bf16 %v63_v10, %v62_v9  ;;  %v66_v16 = vld [vmem:[#allocation5 + $0x80] sm:$0xff]  ;;  %v634_v9 = vld [vmem:[#allocation5 + $0xb8] sm:$0xff]  ;;  %p1774_p6 = pnand %p1773_p5, %p1767_p2 }
  0x30   :  { %v1338_v38 = vld [vmem:[#allocation5 + $0xa2] ss:$0 sm:$0xff] }
  0x31   :  { %1450 = vmatmul.mubr.msk.f32.vlgmr.msra.gmra.mrb[0].mxu0 %vm82_vm0, %v1847_v11  ;;  %1593 = vmatpush3.bf16.msra.mxu1 %v1855_v17 }
  0x32   :  { %1597 = vmatpush3.bf16.msra.mxu0 %v1594_v39  ;;  %1603 = vmatprep.subr.bf16.mxu1 %v1602_v6 }
  0x33   :  { %1599 = vmatprep.subr.bf16.mxu0 %v1598_v47 }
  0x36   :  { %1601 = vmatpush3.bf16.msra.mxu0 %v1598_v47 }
  0x37   :  { %1611 = vmatprep.subr.bf16.mxu0 %v1610_v12 }
 0x104   :  { %v1451_v19 = vpop.f32.mrb[0].mxu0 }
 0x105   :  { %v161_v20 = vadd.f32 %v1451_v19, %v1330_v18  ;;  %v155_v21 = vpop.f32.mrb[1].mxu0 }
 0x106   :  { %v156_v22 = vadd.f32 %v1330_v18, %v155_v21  ;;  %v67_v18 = vld [vmem:[#allocation5 + $0x88] sm:$0xff] }
 0x107   :  { %v1618_v19 = vpack.c.bf16 %v67_v18, %v66_v16 }
 0x108   :  { %v164_v23 = vsub.f32 %v161_v20, %v156_v22 }
 0x10a   :  { %166 = vrot.lane.b32.xlu0 %v164_v23, %s1798_s1 }
 0x10e   :  { %262 = vrot.lane.b32.xlu0 %v164_v23, %s1799_s6 }
 0x17c   :  { %v167_v24 = vpop.permute.xlu0 %166 }
 0x17d   :  { %v170_v25 = vmul.f32 %v167_v24, %v161_v20  ;;  %v169_v26 = vmul.f32 %v167_v24, %v156_v22 }
 0x17f   :  { %1460 = vmatprep.mubr.msk.f32.mxu1 %vm82_vm0, %v169_v26 }
 0x180   :  { %1461 = vmatmul.mubr.msk.f32.vlgmr.msra.gmra.mrb[0].mxu1 %vm82_vm0, %v170_v25  ;;  %v263_v41 = vpop.permute.xlu0 %262 }
 0x181   :  { %1605 = vmatpush3.bf16.msra.mxu1 %v1602_v6 }
 0x253   :  { %v1462_v27 = vpop.f32.mrb[0].mxu1 }
 0x254   :  { %v253_v28 = vsub.f32 0.0, %v1462_v27  ;;  %v243_v29 = vpop.f32.mrb[1].mxu1 }
 0x255   :  { %v252_v30 = vsub.f32 0.0, %v243_v29 }
 0x256   :  { %v256_v31 = vmul.f32 1.442695, %v253_v28 }
 0x257   :  { %v254_v32 = vmul.f32 1.442695, %v252_v30 }
 0x258   :  { %1690 = vpow2.f32 %v256_v31 }
 0x259   :  { %1692 = vpow2.f32 %v254_v32 }
 0x262   :  { %v1691_v33 = vpop.eup %1690 }
 0x263   :  { %v1693_v34 = vpop.eup %1692  ;;  %v259_v35 = vadd.f32 1.0, %v1691_v33 }
 0x264   :  { %v258_v36 = vadd.f32 1.0, %v1693_v34 }
 0x266   :  { %1694 = vrcp.f32 %v258_v36 }
 0x267   :  { %1696 = vrcp.f32 %v259_v35 }
 0x270   :  { %v1695_v40 = vpop.eup %1694 }
 0x271   :  { %v265_v42 = vmul.f32 %v1695_v40, %v263_v41  ;;  %v1697_v43 = vpop.eup %1696  ;;  %v1339_v40 = vld [vmem:[#allocation5 + $0xa3] ss:$0 sm:$0xff] }
 0x272   :  { %v266_v44 = vmul.f32 %v1697_v43, %v263_v41 }
 0x273   :  { %269 = vrot.lane.b32.xlu1 %v265_v42, %s1799_s6 }
 0x277   :  { %271 = vrot.lane.b32.xlu1 %v266_v44, %s1799_s6 }
 0x2e5   :  { %v270_v48 = vpop.permute.xlu1 %269 }
 0x2e6   :  { %v275_v49 = vadd.f32 %v270_v48, %v156_v22  ;;  %v68_v48 = vld [vmem:[#allocation5 + $0x90] sm:$0xff] }
 0x2e8   :  { %283 = vrot.lane.b32.xlu0 %v275_v49, %s1799_s6  ;;  %v69_v49 = vld [vmem:[#allocation5 + $0x98] sm:$0xff] }
 0x2e9   :  { %v272_v50 = vpop.permute.xlu1 %271 }
 0x2ea   :  { %v276_v51 = vadd.f32 %v272_v50, %v156_v22  ;;  %v1622_v50 = vpack.c.bf16 %v69_v49, %v68_v48 }
 0x2ec   :  { %285 = vrot.lane.b32.xlu1 %v276_v51, %s1799_s6  ;;  %v1340_v51 = vld [vmem:[#allocation5 + $0xa4] ss:$0 sm:$0xff] }
 0x35a   :  { %v284_v52 = vpop.permute.xlu0 %283 }
 0x35b   :  { %1471 = vmatprep.mubr.msk.f32.mxu0 %vm82_vm0, %v284_v52 }
 0x35e   :  { %v286_v53 = vpop.permute.xlu1 %285 }
 0x35f   :  { %1472 = vmatmul.mubr.msk.f32.vlgmr.msra.gmra.mrb[2].mxu0 %vm82_vm0, %v286_v53 }
 0x360   :  { %1613 = vmatpush3.bf16.msra.mxu0 %v1610_v12 }
 0x432   :  { %v1473_v55 = vpop.f32.mrb[2].mxu0 }
 0x433   :  { %v363_v56 = vadd.f32 %v1473_v55, %v1335_v54  ;;  %v357_v57 = vpop.f32.mrb[3].mxu0 }
 0x434   :  { %v358_v58 = vadd.f32 %v1335_v54, %v357_v57 }
 0x435   :  { %v1870_v59 = vadd.f32 %v363_v56, %v1847_v11  ;;  %v64_v11 = vld [vmem:[#allocation5 + $0x70] sm:$0xff] }
 0x436   :  { %v366_v60 = vadd.f32 %v358_v58, %v1843_v8  ;;  %v1606_v8 = vpack.c.bf16 %v61_v7, %v60_v5  ;;  %v1614_v15 = vpack.c.bf16 %v65_v13, %v64_v11  ;;  %v1343_v58 = vld [vmem:[#allocation5 + $0xa5] ss:$0 sm:$0xff]  ;;  %v632_v7 = vld [vmem:[#allocation5 + $0xa8] sm:$0xff] }
 0x437   :  { %v371_v61 = vsel %vm82_vm0, %v1870_v59, 0.0  ;;  %v378_v1 = vmul.f32 %v1870_v59, %v1870_v59  ;;  %v635_v11 = vld [vmem:[#allocation5 + $0xc0] sm:$0xff] }
 0x438   :  { %372 = vadd.xlane.f32.xlu1 %v371_v61  ;;  %v368_v62 = vsel %vm82_vm0, %v366_v60, 0.0  ;;  %v377_v63 = vmul.f32 %v366_v60, %v366_v60  ;;  %1607 = vmatprep.subr.bf16.mxu1 %v1606_v8  ;;  %v1630_v12 = vpack.c.bf16 %v635_v11, %v634_v9 }
 0x439   :  { %369 = vadd.xlane.f32.xlu0 %v368_v62  ;;  %v382_v2 = vsel %vm82_vm0, %v378_v1, 0.0  ;;  %1609 = vmatpush3.bf16.msra.mxu1 %v1606_v8  ;;  %v633_v8 = vld [vmem:[#allocation5 + $0xb0] sm:$0xff] }
 0x43a   :  { %v379_v0 = vsel %vm82_vm0, %v377_v63, 0.0  ;;  %1615 = vmatprep.subr.bf16.mxu0 %v1614_v15  ;;  %v1626_v10 = vpack.c.bf16 %v633_v8, %v632_v7 }
 0x43b   :  { %1617 = vmatpush3.bf16.msra.mxu0 %v1614_v15 }
 0x43c   :  { %1619 = vmatprep.subr.bf16.mxu0 %v1618_v19  ;;  %1627 = vmatprep.subr.bf16.mxu1 %v1626_v10 }
 0x43d   :  { %380 = vadd.xlane.f32.xlu0 %v379_v0 }
 0x43f   :  { %1621 = vmatpush3.bf16.msra.mxu0 %v1618_v19 }
 0x440   :  { %1623 = vmatprep.subr.bf16.mxu0 %v1622_v50 }
 0x441   :  { %383 = vadd.xlane.f32.xlu0 %v382_v2 }
 0x443   :  { %1625 = vmatpush3.bf16.msra.mxu0 %v1622_v50 }
 0x4c5   :  { %v373_v22 = vpop.xlane.xlu1 %372 }
 0x4c6   :  { %v370_v20 = vpop.xlane.xlu0 %369  ;;  %v376_v24 = vmul.f32 0.03125, %v373_v22 }
 0x4c7   :  { %v375_v21 = vmul.f32 0.03125, %v370_v20 }
 0x4c8   :  { %v388_v29 = vmul.f32 %v376_v24, %v376_v24  ;;  %v394_v41 = vsub.f32 %v1870_v59, %v376_v24 }
 0x4c9   :  { %v387_v25 = vmul.f32 %v375_v21, %v375_v21  ;;  %v393_v36 = vsub.f32 %v366_v60, %v375_v21 }
 0x4ca   :  { %v381_v23 = vpop.xlane.xlu0 %380 }
 0x4cb   :  { %v385_v26 = vmul.f32 0.03125, %v381_v23 }
 0x4cd   :  { %v389_v27 = vsub.f32 %v385_v26, %v387_v25 }
 0x4ce   :  { %v384_v28 = vpop.xlane.xlu0 %383 }
 0x4cf   :  { %v391_v30 = vmax.f32 %v389_v27, 0.0  ;;  %v386_v31 = vmul.f32 0.03125, %v384_v28 }
 0x4d1   :  { %v395_v32 = vadd.f32 1e-05, %v391_v30  ;;  %v390_v33 = vsub.f32 %v386_v31, %v388_v29 }
 0x4d3   :  { %1698 = vrsqrt.f32 %v395_v32  ;;  %v392_v34 = vmax.f32 %v390_v33, 0.0 }
 0x4d5   :  { %v396_v35 = vadd.f32 1e-05, %v392_v34  ;;  %v1346_v34 = vld [vmem:[#allocation5 + $0xa6] ss:$0 sm:$0xff] }
 0x4d7   :  { %1700 = vrsqrt.f32 %v396_v35 }
 0x4dd   :  { %v1699_v37 = vpop.eup %1698 }
 0x4de   :  { %v399_v39 = vmul.f32 %v1699_v37, %v393_v36 }
 0x4e0   :  { %v405_v42 = vmul.f32 %v1338_v38, %v399_v39 }
 0x4e1   :  { %v1701_v43 = vpop.eup %1700 }
 0x4e2   :  { %v400_v44 = vmul.f32 %v1701_v43, %v394_v41  ;;  %v411_v45 = vadd.f32 %v1339_v40, %v405_v42  ;;  %v1348_v43 = vld [vmem:[#allocation5 + $0x148] ss:$0 sm:$0xff] }
 0x4e4   :  { %v406_v46 = vmul.f32 %v1338_v38, %v400_v44  ;;  %1482 = vmatprep.mubr.msk.f32.mxu1 %vm82_vm0, %v411_v45  ;;  %v1347_v38 = vld [vmem:[#allocation5 + $0xa7] ss:$0 sm:$0xff] }
 0x4e6   :  { %v412_v47 = vadd.f32 %v1339_v40, %v406_v46 }
 0x4e8   :  { %1483 = vmatmul.mubr.msk.f32.vlgmr.msra.gmra.mrb[2].mxu1 %vm82_vm0, %v412_v47 }
 0x4e9   :  { %1629 = vmatpush3.bf16.msra.mxu1 %v1626_v10 }
 0x4ea   :  { %1631 = vmatprep.subr.bf16.mxu1 %v1630_v12 }
 0x4ed   :  { %1633 = vmatpush3.bf16.msra.mxu1 %v1630_v12 }
 0x4ee   :  { %1635 = vmatprep.subr.bf16.mxu1 %v1851_v14 }
 0x5bb   :  { %v1484_v52 = vpop.f32.mrb[2].mxu1 }
 0x5bc   :  { %v495_v53 = vadd.f32 %v1484_v52, %v1340_v51  ;;  %v489_v54 = vpop.f32.mrb[3].mxu1 }
 0x5bd   :  { %v490_v55 = vadd.f32 %v1340_v51, %v489_v54 }
 0x5be   :  { %v499_v57 = vmax.f32 %v495_v53, 0.0 }
 0x5bf   :  { %v498_v56 = vmax.f32 %v490_v55, 0.0 }
 0x5c1   :  { %1501 = vmatprep.mubr.msk.f32.mxu0 %vm504_vm1, %v498_v56 }
 0x5c2   :  { %1502 = vmatmul.mubr.msk.f32.vlgmr.msra.gmra.mrb[4].mxu0 %vm504_vm1, %v499_v57 }
 0x695   :  { %v1503_v59 = vpop.f32.mrb[4].mxu0 }
 0x696   :  { %v583_v60 = vadd.f32 %v1503_v59, %v1343_v58  ;;  %v577_v61 = vpop.f32.mrb[5].mxu0 }
 0x697   :  { %v578_v62 = vadd.f32 %v1343_v58, %v577_v61  ;;  %v637_v61 = vld [vmem:[#allocation5 + $0xd0] sm:$0xff] }
 0x698   :  { %v587_v63 = vadd.f32 %v583_v60, %v412_v47  ;;  %v636_v60 = vld [vmem:[#allocation5 + $0xc8] sm:$0xff] }
 0x699   :  { %v586_v0 = vadd.f32 %v578_v62, %v411_v45  ;;  %v1642_v62 = vpack.c.bf16 %v637_v61, %v636_v60  ;;  %v1357_v61 = vld [vmem:[#allocation5 + $0x14b] ss:$0 sm:$0xff] }
 0x69a   :  { %v591_v1 = vsel %vm82_vm0, %v587_v63, 0.0  ;;  %v597_v2 = vmul.f32 %v587_v63, %v587_v63 }
 0x69b   :  { %592 = vadd.xlane.f32.xlu0 %v591_v1  ;;  %v588_v3 = vsel %vm82_vm0, %v586_v0, 0.0  ;;  %v596_v4 = vmul.f32 %v586_v0, %v586_v0  ;;  %1643 = vmatprep.subr.bf16.mxu0 %v1642_v62 }
 0x69c   :  { %589 = vadd.xlane.f32.xlu1 %v588_v3  ;;  %v601_v5 = vsel %vm82_vm0, %v597_v2, 0.0  ;;  %1645 = vmatpush3.bf16.msra.mxu0 %v1642_v62 }
 0x69d   :  { %v598_v6 = vsel %vm82_vm0, %v596_v4, 0.0  ;;  %v638_v4 = vld [vmem:[#allocation5 + $0xd8] sm:$0xff] }
 0x69f   :  { %602 = vadd.xlane.f32.xlu0 %v601_v5  ;;  %v639_v5 = vld [vmem:[#allocation5 + $0xe0] sm:$0xff] }
 0x6a0   :  { %599 = vadd.xlane.f32.xlu1 %v598_v6  ;;  %v1646_v6 = vpack.c.bf16 %v639_v5, %v638_v4  ;;  %v650_v5 = vld [vmem:[#allocation5 + $0x138] sm:$0xff] }
 0x6a2   :  { %1647 = vmatprep.subr.bf16.mxu0 %v1646_v6 }
 0x6a3   :  { %1649 = vmatpush3.bf16.msra.mxu0 %v1646_v6  ;;  %v651_v6 = vld [vmem:[#allocation5 + $0x140] sm:$0xff] }
 0x728   :  { %v593_v13 = vpop.xlane.xlu0 %592 }
 0x729   :  { %v595_v15 = vmul.f32 0.03125, %v593_v13  ;;  %v590_v16 = vpop.xlane.xlu1 %589  ;;  %v1353_v13 = vld [vmem:[#allocation5 + $0x149] ss:$0 sm:$0xff] }
 0x72a   :  { %v594_v18 = vmul.f32 0.03125, %v590_v16 }
 0x72b   :  { %v607_v20 = vmul.f32 %v595_v15, %v595_v15  ;;  %v613_v31 = vsub.f32 %v587_v63, %v595_v15 }
 0x72c   :  { %v603_v19 = vpop.xlane.xlu0 %602  ;;  %v606_v23 = vmul.f32 %v594_v18, %v594_v18  ;;  %v612_v33 = vsub.f32 %v586_v0, %v594_v18 }
 0x72d   :  { %v605_v21 = vmul.f32 0.03125, %v603_v19  ;;  %v600_v22 = vpop.xlane.xlu1 %599 }
 0x72e   :  { %v604_v24 = vmul.f32 0.03125, %v600_v22 }
 0x72f   :  { %v609_v25 = vsub.f32 %v605_v21, %v607_v20 }
 0x730   :  { %v608_v26 = vsub.f32 %v604_v24, %v606_v23 }
 0x731   :  { %v611_v27 = vmax.f32 %v609_v25, 0.0 }
 0x732   :  { %v610_v28 = vmax.f32 %v608_v26, 0.0 }
 0x733   :  { %v615_v29 = vadd.f32 1e-05, %v611_v27 }
 0x734   :  { %v614_v30 = vadd.f32 1e-05, %v610_v28  ;;  %v640_v28 = vld [vmem:[#allocation5 + $0xe8] sm:$0xff] }
 0x735   :  { %1702 = vrsqrt.f32 %v615_v29  ;;  %v641_v29 = vld [vmem:[#allocation5 + $0xf0] sm:$0xff] }
 0x736   :  { %1704 = vrsqrt.f32 %v614_v30  ;;  %v642_v30 = vld [vmem:[#allocation5 + $0xf8] sm:$0xff] }
 0x73f   :  { %v1703_v32 = vpop.eup %1702 }
 0x740   :  { %v1705_v35 = vpop.eup %1704  ;;  %v619_v36 = vmul.f32 %v1703_v32, %v613_v31  ;;  %v1650_v31 = vpack.c.bf16 %v641_v29, %v640_v28  ;;  %v643_v32 = vld [vmem:[#allocation5 + $0x100] sm:$0xff] }
 0x741   :  { %v618_v37 = vmul.f32 %v1705_v35, %v612_v33  ;;  %v1654_v33 = vpack.c.bf16 %v643_v32, %v642_v30  ;;  %v645_v35 = vld [vmem:[#allocation5 + $0x110] sm:$0xff]  ;;  %v1230_v32 = vld [vmem:[#allocation5 + $0x160] sm:$0xff] }
 0x742   :  { %v625_v39 = vmul.f32 %v1346_v34, %v619_v36  ;;  %v646_v36 = vld [vmem:[#allocation5 + $0x118] sm:$0xff]  ;;  %v1228_v30 = vld [vmem:[#allocation5 + $0x150] sm:$0xff] }
 0x743   :  { %v624_v40 = vmul.f32 %v1346_v34, %v618_v37  ;;  %v644_v34 = vld [vmem:[#allocation5 + $0x108] sm:$0xff] }
 0x744   :  { %v1892_v42 = vadd.f32 %v1347_v38, %v625_v39  ;;  %v1658_v37 = vpack.c.bf16 %v645_v35, %v644_v34  ;;  %v1231_v35 = vld [vmem:[#allocation5 + $0x168] sm:$0xff] }
 0x745   :  { %v1890_v41 = vadd.f32 %v1347_v38, %v624_v40  ;;  %v647_v38 = vld [vmem:[#allocation5 + $0x120] sm:$0xff]  ;;  %v648_v40 = vld [vmem:[#allocation5 + $0x128] sm:$0xff] }
 0x746   :  { %v1662_v39 = vpack.c.bf16 %v647_v38, %v646_v36  ;;  %1659 = vmatprep.subr.bf16.mxu0 %v1658_v37  ;;  %v1802_v36 = vmov 0.0  }
 0x747   :  { %1512 = vmatprep.mubr.msk.f32.mxu1 %vm82_vm0, %v1890_v41 }
 0x748   :  { %1513 = vmatmul.mubr.msk.f32.vlgmr.msra.gmra.mrb[4].mxu1 %vm82_vm0, %v1892_v42 }
 0x749   :  { %1637 = vmatpush3.bf16.msra.mxu1 %v1851_v14 }
 0x74a   :  { %1639 = vmatprep.subr.bf16.mxu1 %v1855_v17 }
 0x74d   :  { %1641 = vmatpush3.bf16.msra.mxu1 %v1855_v17 }
 0x74e   :  { %1651 = vmatprep.subr.bf16.mxu1 %v1650_v31 }
 0x81b   :  { %v1514_v44 = vpop.f32.mrb[4].mxu1 }
 0x81c   :  { %v742_v45 = vadd.f32 %v1514_v44, %v1348_v43  ;;  %v736_v46 = vpop.f32.mrb[5].mxu1 }
 0x81d   :  { %v737_v47 = vadd.f32 %v1348_v43, %v736_v46 }
 0x81f   :  { %v745_v48 = vsub.f32 %v742_v45, %v737_v47 }
 0x821   :  { %843 = vrot.lane.b32.xlu0 %v745_v48, %s1799_s6  ;;  %747 = vrot.lane.b32.xlu1 %v745_v48, %s1798_s1 }
 0x893   :  { %v748_v49 = vpop.permute.xlu1 %747  ;;  %v844_v0 = vpop.permute.xlu0 %843 }
 0x894   :  { %v750_v50 = vmul.f32 %v748_v49, %v737_v47  ;;  %v751_v51 = vmul.f32 %v748_v49, %v742_v45 }
 0x896   :  { %1523 = vmatprep.mubr.msk.f32.mxu1 %vm82_vm0, %v750_v50 }
 0x897   :  { %1524 = vmatmul.mubr.msk.f32.vlgmr.msra.gmra.mrb[6].mxu1 %vm82_vm0, %v751_v51 }
 0x898   :  { %1653 = vmatpush3.bf16.msra.mxu1 %v1650_v31  ;;  %v1229_v31 = vld [vmem:[#allocation5 + $0x158] sm:$0xff] }
 0x899   :  { %1655 = vmatprep.subr.bf16.mxu1 %v1654_v33  ;;  %v1675_v34 = vpack.c.bf16 %v1229_v31, %v1228_v30 }
 0x89c   :  { %1657 = vmatpush3.bf16.msra.mxu1 %v1654_v33  ;;  %v1800_v33 = vmov 0.0|0.0  }
 0x89d   :  { %1674 = vmatprep.subr.bf16.mxu1 %v1800_v33 }
 0x96a   :  { %v1525_v14 = vpop.f32.mrb[6].mxu1 }
 0x96b   :  { %v834_v52 = vsub.f32 0.0, %v1525_v14  ;;  %v824_v17 = vpop.f32.mrb[7].mxu1 }
 0x96c   :  { %v833_v53 = vsub.f32 0.0, %v824_v17 }
 0x96d   :  { %v837_v54 = vmul.f32 1.442695, %v834_v52 }
 0x96e   :  { %v835_v55 = vmul.f32 1.442695, %v833_v53 }
 0x96f   :  { %1706 = vpow2.f32 %v837_v54 }
 0x970   :  { %1708 = vpow2.f32 %v835_v55 }
 0x979   :  { %v1707_v56 = vpop.eup %1706 }
 0x97a   :  { %v1709_v57 = vpop.eup %1708  ;;  %v840_v58 = vadd.f32 1.0, %v1707_v56 }
 0x97b   :  { %v839_v59 = vadd.f32 1.0, %v1709_v57 }
 0x97d   :  { %1710 = vrcp.f32 %v839_v59  ;;  %v1356_v59 = vld [vmem:[#allocation5 + $0x14a] ss:$0 sm:$0xff] }
 0x97e   :  { %1712 = vrcp.f32 %v840_v58 }
 0x987   :  { %v1711_v63 = vpop.eup %1710 }
 0x988   :  { %v846_v1 = vmul.f32 %v1711_v63, %v844_v0  ;;  %v1713_v2 = vpop.eup %1712 }
 0x989   :  { %v847_v3 = vmul.f32 %v1713_v2, %v844_v0 }
 0x98a   :  { %850 = vrot.lane.b32.xlu1 %v846_v1, %s1799_s6 }
 0x98e   :  { %852 = vrot.lane.b32.xlu1 %v847_v3, %s1799_s6 }
 0x9fc   :  { %v851_v7 = vpop.permute.xlu1 %850 }
 0x9fd   :  { %v856_v8 = vadd.f32 %v851_v7, %v737_v47  ;;  %v1670_v7 = vpack.c.bf16 %v651_v6, %v650_v5 }
 0x9ff   :  { %864 = vrot.lane.b32.xlu0 %v856_v8, %s1799_s6  ;;  %v1358_v8 = vld [vmem:[#allocation5 + $0x14c] ss:$0 sm:$0xff] }
 0xa00   :  { %v853_v9 = vpop.permute.xlu1 %852 }
 0xa01   :  { %v857_v10 = vadd.f32 %v853_v9, %v737_v47 }
 0xa03   :  { %866 = vrot.lane.b32.xlu1 %v857_v10, %s1799_s6 }
 0xa71   :  { %v865_v11 = vpop.permute.xlu0 %864 }
 0xa72   :  { %1534 = vmatprep.mubr.msk.f32.mxu0 %vm82_vm0, %v865_v11 }
 0xa75   :  { %v867_v12 = vpop.permute.xlu1 %866 }
 0xa76   :  { %1535 = vmatmul.mubr.msk.f32.vlgmr.msra.gmra.mrb[6].mxu0 %vm82_vm0, %v867_v12 }
 0xa77   :  { %1661 = vmatpush3.bf16.msra.mxu0 %v1658_v37  ;;  %v1678_v37 = vpack.c.bf16 %v1231_v35, %v1230_v32 }
 0xa78   :  { %1663 = vmatprep.subr.bf16.mxu0 %v1662_v39 }
 0xa7b   :  { %1665 = vmatpush3.bf16.msra.mxu0 %v1662_v39 }
 0xb49   :  { %v1536_v15 = vpop.f32.mrb[6].mxu0 }
 0xb4a   :  { %v944_v16 = vadd.f32 %v1536_v15, %v1353_v13  ;;  %v938_v18 = vpop.f32.mrb[7].mxu0 }
 0xb4b   :  { %v939_v19 = vadd.f32 %v1353_v13, %v938_v18 }
 0xb4c   :  { %v1912_v20 = vadd.f32 %v944_v16, %v1892_v42  ;;  %v1361_v16 = vld [vmem:[#allocation5 + $0x14d] ss:$0 sm:$0xff] }
 0xb4d   :  { %v947_v21 = vadd.f32 %v939_v19, %v1890_v41  ;;  %v649_v41 = vld [vmem:[#allocation5 + $0x130] sm:$0xff] }
 0xb4e   :  { %v952_v22 = vsel %vm82_vm0, %v1912_v20, 0.0  ;;  %v958_v26 = vmul.f32 %v1912_v20, %v1912_v20  ;;  %v1666_v42 = vpack.c.bf16 %v649_v41, %v648_v40 }
 0xb4f   :  { %953 = vadd.xlane.f32.xlu1 %v952_v22  ;;  %v949_v23 = vsel %vm82_vm0, %v947_v21, 0.0  ;;  %v957_v24 = vmul.f32 %v947_v21, %v947_v21 }
 0xb50   :  { %950 = vadd.xlane.f32.xlu0 %v949_v23  ;;  %v962_v27 = vsel %vm82_vm0, %v958_v26, 0.0  ;;  %1667 = vmatprep.subr.bf16.mxu0 %v1666_v42 }
 0xb51   :  { %v959_v25 = vsel %vm82_vm0, %v957_v24, 0.0  ;;  %1669 = vmatpush3.bf16.msra.mxu0 %v1666_v42 }
 0xb52   :  { %1671 = vmatprep.subr.bf16.mxu0 %v1670_v7 }
 0xb54   :  { %960 = vadd.xlane.f32.xlu0 %v959_v25 }
 0xb55   :  { %1673 = vmatpush3.bf16.msra.mxu0 %v1670_v7 }
 0xb58   :  { %963 = vadd.xlane.f32.xlu0 %v962_v27 }
 0xbdc   :  { %v954_v45 = vpop.xlane.xlu1 %953 }
 0xbdd   :  { %v951_v43 = vpop.xlane.xlu0 %950  ;;  %v956_v47 = vmul.f32 0.03125, %v954_v45 }
 0xbde   :  { %v955_v44 = vmul.f32 0.03125, %v951_v43 }
 0xbdf   :  { %v968_v14 = vmul.f32 %v956_v47, %v956_v47  ;;  %v974_v62 = vsub.f32 %v1912_v20, %v956_v47 }
 0xbe0   :  { %v967_v48 = vmul.f32 %v955_v44, %v955_v44  ;;  %v973_v57 = vsub.f32 %v947_v21, %v955_v44 }
 0xbe1   :  { %v961_v46 = vpop.xlane.xlu0 %960 }
 0xbe2   :  { %v965_v49 = vmul.f32 0.03125, %v961_v46 }
 0xbe4   :  { %v969_v50 = vsub.f32 %v965_v49, %v967_v48 }
 0xbe5   :  { %v964_v51 = vpop.xlane.xlu0 %963 }
 0xbe6   :  { %v971_v52 = vmax.f32 %v969_v50, 0.0  ;;  %v966_v17 = vmul.f32 0.03125, %v964_v51 }
 0xbe8   :  { %v975_v53 = vadd.f32 1e-05, %v971_v52  ;;  %v970_v54 = vsub.f32 %v966_v17, %v968_v14 }
 0xbea   :  { %1714 = vrsqrt.f32 %v975_v53  ;;  %v972_v55 = vmax.f32 %v970_v54, 0.0 }
 0xbec   :  { %v976_v56 = vadd.f32 1e-05, %v972_v55  ;;  %v1364_v55 = vld [vmem:[#allocation5 + $0x14e] ss:$0 sm:$0xff] }
 0xbee   :  { %1716 = vrsqrt.f32 %v976_v56 }
 0xbf4   :  { %v1715_v58 = vpop.eup %1714 }
 0xbf5   :  { %v979_v60 = vmul.f32 %v1715_v58, %v973_v57 }
 0xbf7   :  { %v985_v63 = vmul.f32 %v1356_v59, %v979_v60 }
 0xbf8   :  { %v1717_v0 = vpop.eup %1716 }
 0xbf9   :  { %v980_v1 = vmul.f32 %v1717_v0, %v974_v62  ;;  %v991_v2 = vadd.f32 %v1357_v61, %v985_v63 }
 0xbfb   :  { %v986_v3 = vmul.f32 %v1356_v59, %v980_v1  ;;  %1545 = vmatprep.mubr.msk.f32.mxu1 %vm82_vm0, %v991_v2  ;;  %v1365_v59 = vld [vmem:[#allocation5 + $0x14f] ss:$0 sm:$0xff] }
 0xbfd   :  { %v992_v4 = vadd.f32 %v1357_v61, %v986_v3 }
 0xbff   :  { %1546 = vmatmul.mubr.msk.f32.vlgmr.msra.gmra.mrb[8].mxu1 %vm82_vm0, %v992_v4 }
 0xc00   :  { %1575 = vmatprep.mubr.msk.f32.mxu1 %vm1801_vm2, %v1802_v36  ;;  %1676 = vmatpush3.bf16.msra.mxu1 %v1675_v34 }
 0xc01   :  { %1677 = vmatprep.subr.bf16.mxu1 %v1800_v33 }
 0xc04   :  { %1679 = vmatpush3.bf16.msra.mxu1 %v1678_v37 }
 0xcd2   :  { %v1547_v9 = vpop.f32.mrb[8].mxu1 }
 0xcd3   :  { %v1075_v10 = vadd.f32 %v1547_v9, %v1358_v8  ;;  %v1069_v11 = vpop.f32.mrb[9].mxu1 }
 0xcd4   :  { %v1070_v12 = vadd.f32 %v1358_v8, %v1069_v11 }
 0xcd5   :  { %v1079_v15 = vmax.f32 %v1075_v10, 0.0 }
 0xcd6   :  { %v1078_v13 = vmax.f32 %v1070_v12, 0.0 }
 0xcd8   :  { %1564 = vmatprep.mubr.msk.f32.mxu0 %vm504_vm1, %v1078_v13 }
 0xcd9   :  { %1565 = vmatmul.mubr.msk.f32.vlgmr.msra.gmra.mrb[8].mxu0 %vm504_vm1, %v1079_v15 }
 0xdac   :  { %v1566_v18 = vpop.f32.mrb[8].mxu0 }
 0xdad   :  { %v1162_v19 = vadd.f32 %v1566_v18, %v1361_v16  ;;  %v1156_v20 = vpop.f32.mrb[9].mxu0 }
 0xdae   :  { %v1157_v21 = vadd.f32 %v1361_v16, %v1156_v20 }
 0xdaf   :  { %v1166_v22 = vadd.f32 %v1162_v19, %v992_v4  ;;  %v1366_v19 = vld [vmem:[#allocation5 + $0x170] ss:$0 sm:$0xff] }
 0xdb0   :  { %v1165_v23 = vadd.f32 %v1157_v21, %v991_v2 }
 0xdb1   :  { %v1170_v24 = vsel %vm82_vm0, %v1166_v22, 0.0  ;;  %v1176_v25 = vmul.f32 %v1166_v22, %v1166_v22 }
 0xdb2   :  { %1171 = vadd.xlane.f32.xlu0 %v1170_v24  ;;  %v1167_v26 = vsel %vm82_vm0, %v1165_v23, 0.0  ;;  %v1175_v27 = vmul.f32 %v1165_v23, %v1165_v23 }
 0xdb3   :  { %1168 = vadd.xlane.f32.xlu1 %v1167_v26  ;;  %v1180_v28 = vsel %vm82_vm0, %v1176_v25, 0.0 }
 0xdb4   :  { %v1177_v29 = vsel %vm82_vm0, %v1175_v27, 0.0 }
 0xdb6   :  { %1181 = vadd.xlane.f32.xlu0 %v1180_v28 }
 0xdb7   :  { %1178 = vadd.xlane.f32.xlu1 %v1177_v29 }
 0xe3f   :  { %v1172_v38 = vpop.xlane.xlu0 %1171 }
 0xe40   :  { %v1174_v39 = vmul.f32 0.03125, %v1172_v38  ;;  %v1169_v40 = vpop.xlane.xlu1 %1168 }
 0xe41   :  { %v1173_v41 = vmul.f32 0.03125, %v1169_v40 }
 0xe42   :  { %v1186_v43 = vmul.f32 %v1174_v39, %v1174_v39  ;;  %v1192_v17 = vsub.f32 %v1166_v22, %v1174_v39 }
 0xe43   :  { %v1182_v42 = vpop.xlane.xlu0 %1181  ;;  %v1185_v46 = vmul.f32 %v1173_v41, %v1173_v41  ;;  %v1191_v54 = vsub.f32 %v1165_v23, %v1173_v41 }
 0xe44   :  { %v1184_v44 = vmul.f32 0.03125, %v1182_v42  ;;  %v1179_v45 = vpop.xlane.xlu1 %1178 }
 0xe45   :  { %v1183_v47 = vmul.f32 0.03125, %v1179_v45 }
 0xe46   :  { %v1188_v48 = vsub.f32 %v1184_v44, %v1186_v43 }
 0xe47   :  { %v1187_v49 = vsub.f32 %v1183_v47, %v1185_v46 }
 0xe48   :  { %v1190_v50 = vmax.f32 %v1188_v48, 0.0 }
 0xe49   :  { %v1189_v51 = vmax.f32 %v1187_v49, 0.0 }
 0xe4a   :  { %v1194_v14 = vadd.f32 1e-05, %v1190_v50 }
 0xe4b   :  { %v1193_v52 = vadd.f32 1e-05, %v1189_v51 }
 0xe4c   :  { %1718 = vrsqrt.f32 %v1194_v14 }
 0xe4d   :  { %1720 = vrsqrt.f32 %v1193_v52 }
 0xe56   :  { %v1719_v53 = vpop.eup %1718 }
 0xe57   :  { %v1721_v56 = vpop.eup %1720  ;;  %v1198_v57 = vmul.f32 %v1719_v53, %v1192_v17 }
 0xe58   :  { %v1197_v58 = vmul.f32 %v1721_v56, %v1191_v54 }
 0xe59   :  { %v1204_v60 = vmul.f32 %v1364_v55, %v1198_v57 }
 0xe5a   :  { %v1203_v61 = vmul.f32 %v1364_v55, %v1197_v58 }
 0xe5b   :  { %v1210_v62 = vadd.f32 %v1365_v59, %v1204_v60 }
 0xe5c   :  { %v1209_v63 = vadd.f32 %v1365_v59, %v1203_v61 }
 0xe5d   :  { %v1218_v0 = vsel %vm82_vm0, %v1210_v62, 0.0 }
 0xe5e   :  { %v1211_v1 = vsel %vm82_vm0, %v1209_v63, 0.0  ;;  %v1219_v2 = vrot.slane %v1218_v0, 4 }
 0xe5f   :  { %v1212_v3 = vrot.slane %v1211_v1, 4 }
 0xe60   :  { %v1220_v4 = vadd.f32 %v1219_v2, %v1218_v0 }
 0xe61   :  { %v1213_v5 = vadd.f32 %v1212_v3, %v1211_v1 }
 0xe62   :  { %v1221_v6 = vrot.slane %v1220_v4, 2 }
 0xe63   :  { %v1214_v7 = vrot.slane %v1213_v5, 2 }
 0xe64   :  { %v1222_v8 = vadd.f32 %v1221_v6, %v1220_v4 }
 0xe65   :  { %v1215_v9 = vadd.f32 %v1214_v7, %v1213_v5 }
 0xe66   :  { %v1223_v10 = vrot.slane %v1222_v8, 1 }
 0xe67   :  { %v1216_v11 = vrot.slane %v1215_v9, 1 }
 0xe68   :  { %v1224_v12 = vadd.f32 %v1223_v10, %v1222_v8 }
 0xe69   :  { %v1217_v13 = vadd.f32 %v1216_v11, %v1215_v9 }
 0xe6a   :  { %v1227_v15 = vmul.f32 0.125, %v1224_v12 }
 0xe6b   :  { %v1226_v16 = vmul.f32 0.125, %v1217_v13 }
 0xe6d   :  { %v1240_v18 = vsel %vm1239_vm3, %v1227_v15, %v1226_v16 }
 0xe6e   :  { %1576 = vmatmul.mubr.msk.f32.vlgmr.msra.gmra.mrb[10].mxu1 %vm82_vm0, %v1240_v18 }
 0xf41   :  { %v1309_v20 = vpop.f32.mrb[10].mxu1 }
 0xf42   :  { %v1310_v21 = vadd.f32 %v1366_v19, %v1309_v20  ;;  %v1577_v22 = vpop.f32.mrb[11].mxu1 }
 0xf44   :  { %1313 = vst [vmem:[#allocation7] sm:$0x3] %v1310_v21 }
 0xf45   :  { %1777 = shalt.err (!%p1774_p6)
}
 0xf46   :  { %s1778_s12 = scalar_lea.hbm %s1948_s2, 32 }
 0xf47   :  { %p1779_p7 = scmp.ne.s32.totalorder %s1948_s2, %s1778_s12  ;;  %p1782_p8 = scmp.lt.u32.totalorder %s1778_s12, %s1948_s2 }
 0xf49   :  { %p1784_p9 = pnand %p1782_p8, %p1779_p7 }
 0xf4b   :  { %1787 = shalt.err (!%p1784_p9)
}
 0xf4c   :  { %1323 = dma.vmem_to_hbm [thread:$0]  %s1321_s8, 32, %s1948_s2, [#allocation4]  }
 0xf4d   :  { %1792 = dma.done.wait [#allocation4], 32  }
 0xf4e   :  { %1793 = vsyncadd [#allocation4], 4294967264 }
 0xf4f   :  { %1327 = vsyncpa [#allocation3], 1 }
 0xf50   :  { %1328 = vsyncpa [#allocation6], 1 }
 0xf51   :  { %1329 = vsyncpa [#allocation4], 1 }

</bundles_post_ra>
